<compile_context>
chip_gen: v5e
topology: v5e:2x2
jax: 0.10.0
libtpu: 0.0.40
codegen_flags: <defaults>
</compile_context>

<pallas_src>
import math

import jax
import jax.numpy as jnp
from jax.experimental import pallas as pl
from jax.experimental.pallas import tpu as pltpu


def _drop_path_kernel(scale_ref, x_ref, o_ref):
    """Per-sample broadcast multiply.

    scale_ref : VMEM (TB, 1)  x.dtype -- 0 (dropped) or 1/keep_prob (kept)
    x_ref     : VMEM (TB, TL) x.dtype -- input tile
    o_ref     : VMEM (TB, TL) x.dtype -- output tile
    """
    o_ref[...] = x_ref[...] * scale_ref[...]


def _choose_tiles(B: int, Lp: int, itemsize: int):
    # dtype-aware packed-vreg sublane height: 8 (f32), 16 (bf16), 32 (int8/fp8).
    sub = 8 * max(1, 4 // itemsize)
    if B <= sub:
        TB = B                                   # full-extent block (always legal)
    else:
        TB = min((B // sub) * sub, 128)          # multiple of the packed height
    # ~2 MiB per buffer -> in+out double-buffered = ~8 MiB total VMEM,
    # safely under every generation's default scoped limit (16/32/32 MiB).
    target_bytes = 2 * 1024 * 1024
    TL = (target_bytes // (TB * itemsize)) // 128 * 128
    TL = max(128, TL)
    TL = min(TL, Lp)
    return TB, TL


def drop_path(x, drop_prob: float = 0.0, training: bool = False,
              scale_by_keep: bool = True, seed: int = 0, key=None,
              donate: bool = False, force_pallas: bool = False):
    """JAX/Pallas equivalent of timm's drop_path (stochastic depth) forward."""
    if drop_prob == 0.0 or not training:
        return x

    keep_prob = 1.0 - drop_prob
    B = x.shape[0]
    L = math.prod(x.shape[1:]) if x.ndim > 1 else 1
    x2 = x.reshape(B, L)

    # Per-sample keep mask drawn once in the wrapper (host-side jax.random),
    # so every L tile of a sample sees the identical scale.
    # TODO(synk): PyTorch's bernoulli_ RNG stream has no JAX equivalent; the
    # mask distribution is identical but the draws differ.
    if key is None:
        key = jax.random.PRNGKey(seed)
    mask = jax.random.bernoulli(key, p=keep_prob, shape=(B, 1))
    if scale_by_keep and keep_prob > 0.0:
        scale = mask.astype(jnp.float32) / jnp.float32(keep_prob)
    else:
        scale = mask.astype(jnp.float32)
    scale = scale.astype(x2.dtype)               # multiply runs in input dtype

    itemsize = jnp.dtype(x2.dtype).itemsize

    # Small-tensor fast path: pallas_call launch overhead would dominate.
    if not force_pallas and B * L * itemsize < (1 << 20):
        return (x2 * scale).reshape(x.shape)

    # Pad the flattened feature axis to a multiple of 128 so blocks are
    # lane-dense (unmasked vst) and bounded in size.
    Lp = ((L + 127) // 128) * 128
    if Lp != L:
        x2 = jnp.pad(x2, ((0, 0), (0, Lp - L)))

    TB, TL = _choose_tiles(B, Lp, itemsize)
    grid = (pl.cdiv(B, TB), pl.cdiv(Lp, TL))     # lane axis innermost -> scale stays resident

    out = pl.pallas_call(
        _drop_path_kernel,
        out_shape=jax.ShapeDtypeStruct((B, Lp), x2.dtype),
        grid=grid,
        in_specs=[
            pl.BlockSpec((TB, 1), lambda i, j: (i, 0)),    # per-sample scale
            pl.BlockSpec((TB, TL), lambda i, j: (i, j)),   # x tile
        ],
        out_specs=pl.BlockSpec((TB, TL), lambda i, j: (i, j)),
        compiler_params=pltpu.CompilerParams(
            dimension_semantics=("parallel", "parallel")),
        input_output_aliases=({1: 0} if donate else {}),
    )(scale, x2)

    if Lp != L:
        out = out[:, :L]
    return out.reshape(x.shape)


class DropPath:
    """Drop paths (Stochastic Depth) per sample."""

    def __init__(self, drop_prob: float = 0.0, scale_by_keep: bool = True):
        self.drop_prob = drop_prob
        self.scale_by_keep = scale_by_keep
        self.training = True

    def __call__(self, x, seed: int = 0, key=None, donate: bool = False,
                 force_pallas: bool = False):
        return drop_path(x, self.drop_prob, self.training, self.scale_by_keep,
                         seed=seed, key=key, donate=donate,
                         force_pallas=force_pallas)


def _check_per_sample(y, x, keep_prob, rtol, atol):
    for b in range(x.shape[0]):
        row = jnp.asarray(y[b], dtype=jnp.float32)
        ref = jnp.asarray(x[b], dtype=jnp.float32) * jnp.float32(1.0 / keep_prob)
        is_zero = bool(jnp.all(row == 0.0))
        is_kept = bool(jnp.allclose(row, ref, rtol=rtol, atol=atol))
        assert is_zero or is_kept, "per-sample mask semantics violated"


if __name__ == "__main__":
    key = jax.random.PRNGKey(0)

    # ---- f32, NCHW, small shape; force the Pallas path to exercise the kernel ----
    x = jax.random.normal(key, (2, 4, 16, 16), dtype=jnp.float32)
    mod = DropPath(drop_prob=0.25, scale_by_keep=True)
    mod.training = True

    y_train = jax.block_until_ready(mod(x, seed=123, force_pallas=True))
    assert y_train.shape == x.shape and y_train.dtype == x.dtype
    _check_per_sample(y_train, x, 1.0 - mod.drop_prob, rtol=1e-5, atol=1e-6)

    # fast path (plain XLA) must match the Pallas path bit-for-bit (same mask)
    y_fast = jax.block_until_ready(mod(x, seed=123, force_pallas=False))
    assert bool(jnp.array_equal(y_train, y_fast))

    # ---- bf16, feature size not a multiple of 128 -> exercises padding path ----
    key2 = jax.random.PRNGKey(1)
    xb = jax.random.normal(key2, (4, 3, 30, 30), dtype=jnp.bfloat16)   # L = 2700
    mod2 = DropPath(drop_prob=0.1, scale_by_keep=True)
    mod2.training = True
    yb = jax.block_until_ready(mod2(xb, seed=7, force_pallas=True))
    assert yb.shape == xb.shape and yb.dtype == xb.dtype
    _check_per_sample(yb, xb, 1.0 - mod2.drop_prob, rtol=2e-2, atol=1e-2)

    # ---- eval / drop_prob==0 path: identity (matches PyTorch semantics) ----
    mod.training = False
    y_eval = jax.block_until_ready(mod(x))
    assert bool(jnp.array_equal(y_eval, x))

    print("KERNEL_OK")
</pallas_src>

<mosaic_0001>
module attributes {stable_mosaic.version = 11 : i64} {
  func.func @_drop_path_kernel(%arg0: i32, %arg1: i32, %arg2: memref<2x1xf32, #tpu.memory_space<vmem>>, %arg3: memref<2x1024xf32, #tpu.memory_space<vmem>>, %arg4: memref<2x1024xf32, #tpu.memory_space<vmem>>) attributes {dimension_semantics = [#tpu.dimension_semantics<parallel>, #tpu.dimension_semantics<parallel>], iteration_bounds = array<i64: 1, 1>, scalar_prefetch = 0 : i64, scratch_operands = 0 : i64, tpu.core_type = #tpu.core_type<tc>, window_params = [{transform_indices = @transform_0, window_bounds = array<i64: 2, 1>}, {transform_indices = @transform_1, window_bounds = array<i64: 2, 1024>}, {transform_indices = @transform_2, window_bounds = array<i64: 2, 1024>}]} {
    %c0 = arith.constant 0 : index
    %c0_0 = arith.constant 0 : index
    %0 = vector.load %arg3[%c0, %c0_0] : memref<2x1024xf32, #tpu.memory_space<vmem>>, vector<2x1024xf32>
    %c0_1 = arith.constant 0 : index
    %c0_2 = arith.constant 0 : index
    %1 = vector.load %arg2[%c0_1, %c0_2] : memref<2x1xf32, #tpu.memory_space<vmem>>, vector<2x1xf32>
    %2 = vector.broadcast %1 : vector<2x1xf32> to vector<2x1024xf32>
    %3 = arith.mulf %0, %2 : vector<2x1024xf32>
    %c0_3 = arith.constant 0 : index
    %c0_4 = arith.constant 0 : index
    %4 = vector.load %arg4[%c0_3, %c0_4] : memref<2x1024xf32, #tpu.memory_space<vmem>>, vector<2x1024xf32>
    tpu.vector_store %arg4[%c0_3, %c0_4], %3 {strides = array<i32>} : memref<2x1024xf32, #tpu.memory_space<vmem>>, vector<2x1024xf32>,
    return
  }
  func.func @transform_0(%arg0: i32, %arg1: i32) -> (i32, i32) {
    %c0_i32 = arith.constant 0 : i32
    %c0_i32_0 = arith.constant 0 : i32
    return %arg0, %c0_i32 : i32, i32
  }
  func.func @transform_1(%arg0: i32, %arg1: i32) -> (i32, i32) {
    %c0_i32 = arith.constant 0 : i32
    return %arg0, %arg1 : i32, i32
  }
  func.func @transform_2(%arg0: i32, %arg1: i32) -> (i32, i32) {
    %c0_i32 = arith.constant 0 : i32
    return %arg0, %arg1 : i32, i32
  }
}

</mosaic_0001>

<bundles_post_ra>
// kernel: tpu_custom_call.1
= control target key start
LH: loop header
LB: loop body
LE: loop exit
PB: predicated region body
PF: predicated region fallthrough
CT: control target
= control target key end

     0   :  { %7 = vsyncpa [#allocation3], 0  ;;  %s144_s0 = inlined_call_operand.vmem [shape: f32[2,1], index: 0, kind: input, shape index: {}]   ;;  %s145_s1 = inlined_call_operand.hbm [shape: f32[2,1024], index: 1, kind: input, shape index: {}]   ;;  %s146_s2 = inlined_call_operand.hbm [shape: f32[2,1024], index: 2, kind: output, shape index: {}]  }
   0x1   :  { %8 = vsyncpa [#allocation4], 0  ;;  %s16_s11 = sshll.u32 %s145_s1, 4  ;;  %s116_s12 = smov [#allocation2]   ;;  %s17_s11 = int_to_ptr.hbm [resolvable:$true] %s16_s11 }
   0x2   :  { %s18_s13 = sshll.u32 %s116_s12, 4  ;;  %s19_s13 = int_to_ptr.vmem [resolvable:$true] %s18_s13 }
   0x3   :  { %21 = dma.hbm_to_vmem [thread:$0]  %s17_s11, 256, %s19_s13, [#allocation3]  }
   0x4   :  { %112 = dma.done.wait [#allocation3], 256  }
   0x5   :  { %113 = vsyncadd [#allocation3], 4294967040  ;;  %v117_v0 = vmov 0   ;;  %v28_v1 = vld [vmem:[%s144_s0] sm:$0x3]  ;;  %v27_v7 = vld [vmem:[#allocation2 + $0x8] sm:$0xff] }
   0x6   :  { %63 = vset.pattern.permute.xlu0 %v117_v0  ;;  %v118_v2 = vmov 269488144   ;;  %v26_v6 = vld [vmem:[#allocation2] sm:$0xff]  ;;  %s119_s1 = smov [#allocation5]   ;;  %s49_s19 = sshll.u32 %s146_s2, 4  ;;  %s50_s19 = int_to_ptr.hbm [resolvable:$true] %s49_s19 }
   0x7   :  { %31 = vperm.xlu0 %63, %v28_v1   ;;  %v34_v3 = vunpack.c.l.s4 %v118_v2  ;;  %s47_s16 = sshll.u32 %s119_s1, 4  ;;  %s48_s16 = int_to_ptr.vmem [resolvable:$true] %s47_s16 }
   0x9   :  { %v35_v4 = vunpack.c.0.s8 %v34_v3 }
  0x79   :  { %v32_v5 = vpop.permute.xlu0 %31 }
  0x7a   :  { %v36_v8 = vperm.slane %v32_v5, %v35_v4 }
  0x7c   :  { %v38_v9 = vmul.f32 %v36_v8, %v26_v6  ;;  %v39_v10 = vmul.f32 %v36_v8, %v27_v7 }
  0x7e   :  { %40 = vst [vmem:[#allocation5] sm:$0xff] %v38_v9 }
  0x7f   :  { %41 = vst [vmem:[#allocation5 + $0x8] sm:$0xff] %v39_v10 }
  0x80   :  { %52 = dma.vmem_to_hbm [thread:$0]  %s48_s16, 256, %s50_s19, [#allocation4]  }
  0x81   :  { %114 = dma.done.wait [#allocation4], 256  }
  0x82   :  { %115 = vsyncadd [#allocation4], 4294967040 }
  0x83   :  { %57 = vsyncpa [#allocation3], 1 }
  0x84   :  { %58 = vsyncpa [#allocation4], 1 }

</bundles_post_ra>
